<compile_context>
chip_gen: v5e
topology: v5e:2x2
jax: 0.10.0
libtpu: 0.0.40
codegen_flags: <defaults>
</compile_context>

<pallas_src>
import jax
import jax.numpy as jnp
from jax.experimental import pallas as pl
from jax.experimental.pallas import tpu as pltpu

LANES = 128      # vreg lane width
ROW_ALIGN = 8    # sublane alignment for row tiles (f32 refs)


def _round_up(x, m):
    return ((x + m - 1) // m) * m


def _dqn_kernel(x_ref, w1_ref, b1_ref, w2_ref, b2_ref, w3_ref, b3_ref, out_ref):
    # x_ref: [TM, n_obs] f32 ; w*_ref: bf16 (lane-padded) ; b*_ref: f32 ;
    # out_ref: [TM, n_actions] f32
    x = x_ref[...].astype(jnp.bfloat16)          # in-kernel cast (free VPU op)

    # layer1 + ReLU  (MXU matmul, f32 accumulate; bias/ReLU in f32 on the VPU)
    h1 = jnp.dot(x, w1_ref[...], preferred_element_type=jnp.float32) + b1_ref[...]
    h1 = jnp.maximum(h1, 0.0)

    # layer2 + ReLU
    h2 = jnp.dot(h1.astype(jnp.bfloat16), w2_ref[...],
                 preferred_element_type=jnp.float32) + b2_ref[...]
    h2 = jnp.maximum(h2, 0.0)

    # layer3 (no activation); slice off the lane padding before the HBM store
    out = jnp.dot(h2.astype(jnp.bfloat16), w3_ref[...],
                  preferred_element_type=jnp.float32) + b3_ref[...]
    out_ref[...] = out[:, :out_ref.shape[1]].astype(out_ref.dtype)


def prepare_params(params):
    """One-time (per parameter-update) prep: lane-pad to 128 and cast weights to bf16.

    Hoisted out of the per-call path so action-selection forwards (B=1..32) don't
    pay 6 extra XLA ops + HBM round-trips every call.
    """
    w1, b1 = params["w1"], params["b1"]
    w2, b2 = params["w2"], params["b2"]
    w3, b3 = params["w3"], params["b3"]

    n_obs, hidden = w1.shape
    n_actions = w3.shape[1]
    Hp = _round_up(hidden, LANES)      # lane-dense hidden width (in-VMEM only)
    Np = _round_up(n_actions, LANES)   # lane-dense layer-3 matmul width (in-VMEM only)

    bf16 = jnp.bfloat16
    prepared = {
        "w1p": jnp.zeros((n_obs, Hp), bf16).at[:, :hidden].set(w1.astype(bf16)),
        "b1p": jnp.zeros((1, Hp), jnp.float32).at[:, :hidden].set(b1),
        "w2p": jnp.zeros((Hp, Hp), bf16).at[:hidden, :hidden].set(w2.astype(bf16)),
        "b2p": jnp.zeros((1, Hp), jnp.float32).at[:, :hidden].set(b2),
        "w3p": jnp.zeros((Hp, Np), bf16).at[:hidden, :n_actions].set(w3.astype(bf16)),
        "b3p": jnp.zeros((1, Np), jnp.float32).at[:, :n_actions].set(b3),
    }
    return prepared, n_actions


def dqn_forward(x, prepared, n_actions, *, block_rows=2048):
    """x: [B, n_observations] f32.  Returns [B, n_actions] f32 Q-values."""
    B, n_obs = x.shape

    # Row tile: as big as block_rows allows (amortize per-grid-step overhead),
    # but for sizable batches keep >= 4 grid steps so v7x's 2 TensorCores both
    # get tiles and the pipeline has steps to overlap.
    TM = _round_up(min(block_rows, B), ROW_ALIGN)
    if B >= 4 * ROW_ALIGN * 8:                       # only split sizable batches
        TM = min(TM, _round_up(pl.cdiv(B, 4), ROW_ALIGN))
    TM = max(TM, ROW_ALIGN)
    grid = (pl.cdiv(B, TM),)                         # ragged tail handled by Pallas

    def resident(a):  # same block every step -> stays VMEM-resident across the grid
        return pl.BlockSpec(a.shape, lambda i: (0,) * a.ndim)

    out = pl.pallas_call(
        _dqn_kernel,
        out_shape=jax.ShapeDtypeStruct((B, n_actions), jnp.float32),
        grid=grid,
        in_specs=[
            pl.BlockSpec((TM, n_obs), lambda i: (i, 0)),   # x tile streams in (f32)
            resident(prepared["w1p"]), resident(prepared["b1p"]),
            resident(prepared["w2p"]), resident(prepared["b2p"]),
            resident(prepared["w3p"]), resident(prepared["b3p"]),
        ],
        # last dim == full array dim (n_actions) -> narrow, unpadded HBM writeback
        out_specs=pl.BlockSpec((TM, n_actions), lambda i: (i, 0)),
        compiler_params=pltpu.CompilerParams(
            dimension_semantics=("parallel",)),            # megacore on v7x
    )(x, prepared["w1p"], prepared["b1p"], prepared["w2p"], prepared["b2p"],
      prepared["w3p"], prepared["b3p"])

    return out


def init_dqn_params(key, n_observations, n_actions):
    """Deterministic init matching PyTorch nn.Linear shapes (weights stored transposed)."""
    hidden = round(n_observations / 2)   # matches the PyTorch module's round()
    k1, k2, k3, k4, k5, k6 = jax.random.split(key, 6)

    def uniform_init(k, shape, fan_in):
        bound = 1.0 / jnp.sqrt(fan_in)
        return jax.random.uniform(k, shape, jnp.float32, -bound, bound)

    return {
        "w1": uniform_init(k1, (n_observations, hidden), n_observations),
        "b1": uniform_init(k2, (1, hidden), n_observations),
        "w2": uniform_init(k3, (hidden, hidden), hidden),
        "b2": uniform_init(k4, (1, hidden), hidden),
        "w3": uniform_init(k5, (hidden, n_actions), hidden),
        "b3": uniform_init(k6, (1, n_actions), hidden),
    }


def dqn_reference_bf16(x, params):
    """Pure-JAX reference mirroring the kernel's bf16-operand / f32-accumulate math."""
    bf16 = jnp.bfloat16
    h1 = jnp.maximum(
        jnp.dot(x.astype(bf16), params["w1"].astype(bf16),
                preferred_element_type=jnp.float32) + params["b1"], 0.0)
    h2 = jnp.maximum(
        jnp.dot(h1.astype(bf16), params["w2"].astype(bf16),
                preferred_element_type=jnp.float32) + params["b2"], 0.0)
    return jnp.dot(h2.astype(bf16), params["w3"].astype(bf16),
                   preferred_element_type=jnp.float32) + params["b3"]


def dqn_reference_f32(x, params):
    """Full-f32 reference (original PyTorch semantics)."""
    h1 = jnp.maximum(x @ params["w1"] + params["b1"], 0.0)
    h2 = jnp.maximum(h1 @ params["w2"] + params["b2"], 0.0)
    return h2 @ params["w3"] + params["b3"]


if __name__ == "__main__":
    n_observations = 32
    n_actions = 4

    key = jax.random.PRNGKey(0)
    kx, kp = jax.random.split(key)
    params = init_dqn_params(kp, n_observations, n_actions)

    # Weight prep happens once (per parameter update), outside the forward path.
    prepared, n_act = prepare_params(params)

    # Small batch (single tile; action-selection regime).
    x_small = jax.random.normal(kx, (8, n_observations), jnp.float32)
    out_small = jax.block_until_ready(dqn_forward(x_small, prepared, n_act))
    assert out_small.shape == (8, n_actions), out_small.shape
    assert jnp.allclose(out_small, dqn_reference_bf16(x_small, params),
                        atol=2e-3, rtol=2e-3), "mismatch vs bf16 JAX reference (small)"
    assert jnp.allclose(out_small, dqn_reference_f32(x_small, params),
                        atol=3e-2, rtol=3e-2), "mismatch vs f32 JAX reference (small)"

    # Larger, non-multiple batch: exercises multiple grid steps + ragged last tile.
    x_big = jax.random.normal(jax.random.fold_in(kx, 1),
                              (200, n_observations), jnp.float32)
    out_big = jax.block_until_ready(
        dqn_forward(x_big, prepared, n_act, block_rows=64))
    assert out_big.shape == (200, n_actions), out_big.shape
    assert jnp.allclose(out_big, dqn_reference_bf16(x_big, params),
                        atol=2e-3, rtol=2e-3), "mismatch vs bf16 JAX reference (big)"
    assert jnp.allclose(out_big, dqn_reference_f32(x_big, params),
                        atol=3e-2, rtol=3e-2), "mismatch vs f32 JAX reference (big)"

    # Default (large) block_rows path as well.
    out_big2 = jax.block_until_ready(dqn_forward(x_big, prepared, n_act))
    assert jnp.allclose(out_big2, out_big, atol=1e-5, rtol=1e-5)

    print("KERNEL_OK")
</pallas_src>

<mosaic_0001>
module attributes {stable_mosaic.version = 11 : i64} {
  func.func @_dqn_kernel(%arg0: i32, %arg1: memref<8x32xf32, #tpu.memory_space<vmem>>, %arg2: memref<32x128xbf16, #tpu.memory_space<vmem>>, %arg3: memref<1x128xf32, #tpu.memory_space<vmem>>, %arg4: memref<128x128xbf16, #tpu.memory_space<vmem>>, %arg5: memref<1x128xf32, #tpu.memory_space<vmem>>, %arg6: memref<128x128xbf16, #tpu.memory_space<vmem>>, %arg7: memref<1x128xf32, #tpu.memory_space<vmem>>, %arg8: memref<8x4xf32, #tpu.memory_space<vmem>>) attributes {dimension_semantics = [#tpu.dimension_semantics<parallel>], iteration_bounds = array<i64: 1>, scalar_prefetch = 0 : i64, scratch_operands = 0 : i64, tpu.core_type = #tpu.core_type<tc>, window_params = [{transform_indices = @transform_0, window_bounds = array<i64: 8, 32>}, {pipeline_mode = #tpu.pipeline_mode<synchronous>, transform_indices = @transform_1, window_bounds = array<i64: 32, 128>}, {pipeline_mode = #tpu.pipeline_mode<synchronous>, transform_indices = @transform_2, window_bounds = array<i64: 1, 128>}, {pipeline_mode = #tpu.pipeline_mode<synchronous>, transform_indices = @transform_3, window_bounds = array<i64: 128, 128>}, {pipeline_mode = #tpu.pipeline_mode<synchronous>, transform_indices = @transform_4, window_bounds = array<i64: 1, 128>}, {pipeline_mode = #tpu.pipeline_mode<synchronous>, transform_indices = @transform_5, window_bounds = array<i64: 128, 128>}, {pipeline_mode = #tpu.pipeline_mode<synchronous>, transform_indices = @transform_6, window_bounds = array<i64: 1, 128>}, {transform_indices = @transform_7, window_bounds = array<i64: 8, 4>}]} {
    %c0 = arith.constant 0 : index
    %c0_0 = arith.constant 0 : index
    %0 = vector.load %arg1[%c0, %c0_0] : memref<8x32xf32, #tpu.memory_space<vmem>>, vector<8x32xf32>
    %1 = arith.truncf %0 : vector<8x32xf32> to vector<8x32xbf16>
    %c0_1 = arith.constant 0 : index
    %c0_2 = arith.constant 0 : index
    %2 = vector.load %arg2[%c0_1, %c0_2] : memref<32x128xbf16, #tpu.memory_space<vmem>>, vector<32x128xbf16>
    %cst = arith.constant dense<0.000000e+00> : vector<8x128xf32>
    %3 = tpu.matmul %1, %2, %cst {dimension_numbers = #tpu.dot_dimension_numbers<[1], [0], [0], [1], [0, 0, 1, 1], [], []>} : vector<8x32xbf16>, vector<32x128xbf16>, vector<8x128xf32> -> vector<8x128xf32>
    %c0_3 = arith.constant 0 : index
    %c0_4 = arith.constant 0 : index
    %4 = vector.load %arg3[%c0_3, %c0_4] : memref<1x128xf32, #tpu.memory_space<vmem>>, vector<1x128xf32>
    %5 = vector.broadcast %4 : vector<1x128xf32> to vector<8x128xf32>
    %6 = arith.addf %3, %5 : vector<8x128xf32>
    %cst_5 = arith.constant 0.000000e+00 : f32
    %7 = vector.broadcast %cst_5 : f32 to vector<8x128xf32>
    %8 = arith.maximumf %6, %7 : vector<8x128xf32>
    %9 = arith.truncf %8 : vector<8x128xf32> to vector<8x128xbf16>
    %c0_6 = arith.constant 0 : index
    %c0_7 = arith.constant 0 : index
    %10 = vector.load %arg4[%c0_6, %c0_7] : memref<128x128xbf16, #tpu.memory_space<vmem>>, vector<128x128xbf16>
    %cst_8 = arith.constant dense<0.000000e+00> : vector<8x128xf32>
    %11 = tpu.matmul %9, %10, %cst_8 {dimension_numbers = #tpu.dot_dimension_numbers<[1], [0], [0], [1], [0, 0, 1, 1], [], []>} : vector<8x128xbf16>, vector<128x128xbf16>, vector<8x128xf32> -> vector<8x128xf32>
    %c0_9 = arith.constant 0 : index
    %c0_10 = arith.constant 0 : index
    %12 = vector.load %arg5[%c0_9, %c0_10] : memref<1x128xf32, #tpu.memory_space<vmem>>, vector<1x128xf32>
    %13 = vector.broadcast %12 : vector<1x128xf32> to vector<8x128xf32>
    %14 = arith.addf %11, %13 : vector<8x128xf32>
    %cst_11 = arith.constant 0.000000e+00 : f32
    %15 = vector.broadcast %cst_11 : f32 to vector<8x128xf32>
    %16 = arith.maximumf %14, %15 : vector<8x128xf32>
    %17 = arith.truncf %16 : vector<8x128xf32> to vector<8x128xbf16>
    %c0_12 = arith.constant 0 : index
    %c0_13 = arith.constant 0 : index
    %18 = vector.load %arg6[%c0_12, %c0_13] : memref<128x128xbf16, #tpu.memory_space<vmem>>, vector<128x128xbf16>
    %cst_14 = arith.constant dense<0.000000e+00> : vector<8x128xf32>
    %19 = tpu.matmul %17, %18, %cst_14 {dimension_numbers = #tpu.dot_dimension_numbers<[1], [0], [0], [1], [0, 0, 1, 1], [], []>} : vector<8x128xbf16>, vector<128x128xbf16>, vector<8x128xf32> -> vector<8x128xf32>
    %c0_15 = arith.constant 0 : index
    %c0_16 = arith.constant 0 : index
    %20 = vector.load %arg7[%c0_15, %c0_16] : memref<1x128xf32, #tpu.memory_space<vmem>>, vector<1x128xf32>
    %21 = vector.broadcast %20 : vector<1x128xf32> to vector<8x128xf32>
    %22 = arith.addf %19, %21 : vector<8x128xf32>
    %23 = vector.extract_strided_slice %22 {offsets = [0, 0], sizes = [8, 4], strides = [1, 1]} : vector<8x128xf32> to vector<8x4xf32>
    %c0_17 = arith.constant 0 : index
    %c0_18 = arith.constant 0 : index
    %24 = vector.load %arg8[%c0_17, %c0_18] : memref<8x4xf32, #tpu.memory_space<vmem>>, vector<8x4xf32>
    tpu.vector_store %arg8[%c0_17, %c0_18], %23 {strides = array<i32>} : memref<8x4xf32, #tpu.memory_space<vmem>>, vector<8x4xf32>,
    return
  }
  func.func @transform_0(%arg0: i32) -> (i32, i32) {
    %c0_i32 = arith.constant 0 : i32
    %c0_i32_0 = arith.constant 0 : i32
    return %arg0, %c0_i32 : i32, i32
  }
  func.func @transform_1(%arg0: i32) -> (i32, i32) {
    %c0_i32 = arith.constant 0 : i32
    %c0_i32_0 = arith.constant 0 : i32
    %c0_i32_1 = arith.constant 0 : i32
    return %c0_i32, %c0_i32_0 : i32, i32
  }
  func.func @transform_2(%arg0: i32) -> (i32, i32) {
    %c0_i32 = arith.constant 0 : i32
    %c0_i32_0 = arith.constant 0 : i32
    %c0_i32_1 = arith.constant 0 : i32
    return %c0_i32, %c0_i32_0 : i32, i32
  }
  func.func @transform_3(%arg0: i32) -> (i32, i32) {
    %c0_i32 = arith.constant 0 : i32
    %c0_i32_0 = arith.constant 0 : i32
    %c0_i32_1 = arith.constant 0 : i32
    return %c0_i32, %c0_i32_0 : i32, i32
  }
  func.func @transform_4(%arg0: i32) -> (i32, i32) {
    %c0_i32 = arith.constant 0 : i32
    %c0_i32_0 = arith.constant 0 : i32
    %c0_i32_1 = arith.constant 0 : i32
    return %c0_i32, %c0_i32_0 : i32, i32
  }
  func.func @transform_5(%arg0: i32) -> (i32, i32) {
    %c0_i32 = arith.constant 0 : i32
    %c0_i32_0 = arith.constant 0 : i32
    %c0_i32_1 = arith.constant 0 : i32
    return %c0_i32, %c0_i32_0 : i32, i32
  }
  func.func @transform_6(%arg0: i32) -> (i32, i32) {
    %c0_i32 = arith.constant 0 : i32
    %c0_i32_0 = arith.constant 0 : i32
    %c0_i32_1 = arith.constant 0 : i32
    return %c0_i32, %c0_i32_0 : i32, i32
  }
  func.func @transform_7(%arg0: i32) -> (i32, i32) {
    %c0_i32 = arith.constant 0 : i32
    %c0_i32_0 = arith.constant 0 : i32
    return %arg0, %c0_i32 : i32, i32
  }
}

</mosaic_0001>

<bundles_post_ra>
// kernel: tpu_custom_call.1
= control target key start
LH: loop header
LB: loop body
LE: loop exit
PB: predicated region body
PF: predicated region fallthrough
CT: control target
= control target key end

     0   :  { %12 = vsyncpa [#allocation3], 0  ;;  %s574_s0 = inlined_call_operand.hbm [shape: f32[8,32], index: 0, kind: input, shape index: {}]   ;;  %s575_s1 = inlined_call_operand.hbm [shape: bf16[32,128], index: 1, kind: input, shape index: {}]   ;;  %s576_s2 = inlined_call_operand.vmem [shape: f32[1,128], index: 2, kind: input, shape index: {}]   ;;  %s577_s3 = inlined_call_operand.hbm [shape: bf16[128,128], index: 3, kind: input, shape index: {}]   ;;  %s578_s4 = inlined_call_operand.vmem [shape: f32[1,128], index: 4, kind: input, shape index: {}]   ;;  %s579_s5 = inlined_call_operand.hbm [shape: bf16[128,128], index: 5, kind: input, shape index: {}]   ;;  %s580_s6 = inlined_call_operand.vmem [shape: f32[1,128], index: 6, kind: input, shape index: {}]   ;;  %s581_s7 = inlined_call_operand.vmem [shape: f32[8,4], index: 7, kind: output, shape index: {}]  }
   0x1   :  { %13 = vsyncpa [#allocation5], 0  ;;  %s30_s26 = sshll.u32 %s575_s1, 4  ;;  %s31_s26 = int_to_ptr.hbm [resolvable:$true] %s30_s26 }
   0x2   :  { %14 = vsyncpa [#allocation8], 0  ;;  %s504_s27 = smov [#allocation4]   ;;  %s20_s8 = sshll.u32 %s574_s0, 4  ;;  %s21_s8 = int_to_ptr.hbm [resolvable:$true] %s20_s8 }
   0x3   :  { %s32_s28 = sshll.u32 %s504_s27, 4  ;;  %s505_s9 = smov 64   ;;  %s33_s28 = int_to_ptr.vmem [resolvable:$true] %s32_s28 }
   0x4   :  { %s506_s10 = smov 4   ;;  %s507_s11 = smov [#allocation2]  }
   0x5   :  { %38 = dma.hbm_to_vmem [thread:$0]  %s31_s26, 256, %s33_s28, [#allocation5], %s505_s9, %s505_s9, %s506_s10  }
   0x6   :  { %s22_s12 = sshll.u32 %s507_s11, 4  ;;  %s45_s15 = sshll.u32 %s577_s3, 4  ;;  %s23_s12 = int_to_ptr.vmem [resolvable:$true] %s22_s12  ;;  %s46_s15 = int_to_ptr.hbm [resolvable:$true] %s45_s15 }
   0x7   :  { %25 = dma.hbm_to_vmem [thread:$0]  %s21_s8, 128, %s23_s12, [#allocation3]  }
   0x8   :  { %s60_s17 = sshll.u32 %s579_s5, 4  ;;  %s508_s18 = smov [#allocation6]   ;;  %s61_s17 = int_to_ptr.hbm [resolvable:$true] %s60_s17 }
   0x9   :  { %s47_s19 = sshll.u32 %s508_s18, 4  ;;  %s509_s0 = smov [#allocation7]   ;;  %s48_s19 = int_to_ptr.vmem [resolvable:$true] %s47_s19 }
   0xa   :  { %53 = dma.hbm_to_vmem [thread:$0]  %s46_s15, 1024, %s48_s19, [#allocation5], %s505_s9, %s505_s9, %s506_s10  }
   0xb   :  { %s62_s20 = sshll.u32 %s509_s0, 4  ;;  %s63_s20 = int_to_ptr.vmem [resolvable:$true] %s62_s20 }
   0xc   :  { %68 = dma.hbm_to_vmem [thread:$0]  %s61_s17, 1024, %s63_s20, [#allocation8], %s505_s9, %s505_s9, %s506_s10  }
   0xd   :  { %498 = dma.done.wait [#allocation3], 128  }
   0xe   :  { %499 = vsyncadd [#allocation3], 4294967168 }
   0xf   :  { %500 = dma.done.wait [#allocation5], 1280  }
  0x10   :  { %501 = vsyncadd [#allocation5], 4294966016 }
  0x11   :  { %502 = dma.done.wait [#allocation8], 1024  }
  0x12   :  { %503 = vsyncadd [#allocation8], 4294966272  ;;  %v376_v0 = vld [vmem:[#allocation4 + $0x8] sm:$0xff]  ;;  %v375_v2 = vld [vmem:[#allocation4] sm:$0xff]  ;;  %vm110_vm0 = vcmask 261120   ;;  %vm293_vm1 = vcmask 31744  }
  0x13   :  { %v384_v1 = vld [vmem:[#allocation6 + $0x38] sm:$0xff]  ;;  %120 = vmatpush.bf16.msra.mxu0 %v376_v0  ;;  %v88_v3 = vld [vmem:[#allocation2] sm:$0xff]  ;;  %v383_v4 = vld [vmem:[#allocation6 + $0x30] sm:$0xff] }
  0x14   :  { %197 = vmatpush.bf16.msra.mxu1 %v384_v1  ;;  %v89_v5 = vpack.c.bf16 %v88_v3, %v88_v3  ;;  %v382_v6 = vld [vmem:[#allocation6 + $0x28] sm:$0xff]  ;;  %v381_v7 = vld [vmem:[#allocation6 + $0x20] sm:$0xff]  ;;  %v380_v8 = vld [vmem:[#allocation6 + $0x18] sm:$0xff] }
  0x15   :  { %v379_v9 = vld [vmem:[#allocation6 + $0x10] sm:$0xff]  ;;  %v378_v10 = vld [vmem:[#allocation6 + $0x8] sm:$0xff]  ;;  %v377_v11 = vld [vmem:[#allocation6] sm:$0xff] }
  0x16   :  { %v392_v12 = vld [vmem:[#allocation7 + $0x38] sm:$0xff]  ;;  %v391_v13 = vld [vmem:[#allocation7 + $0x30] sm:$0xff]  ;;  %v390_v14 = vld [vmem:[#allocation7 + $0x28] sm:$0xff] }
  0x17   :  { %121 = vmatpush.bf16.msra.mxu0 %v375_v2  ;;  %280 = vmatpush.bf16.msra.mxu2 %v392_v12  ;;  %v389_v15 = vld [vmem:[#allocation7 + $0x20] sm:$0xff]  ;;  %v388_v16 = vld [vmem:[#allocation7 + $0x18] sm:$0xff]  ;;  %v387_v17 = vld [vmem:[#allocation7 + $0x10] sm:$0xff] }
  0x18   :  { %198 = vmatpush.bf16.msra.mxu1 %v383_v4  ;;  %v399_v18 = vld [vmem:[%s576_s2] ss:$0 sm:$0xff]  ;;  %v385_v25 = vld [vmem:[#allocation7] sm:$0xff] }
  0x19   :  { %v386_v24 = vld [vmem:[#allocation7 + $0x8] sm:$0xff] }
  0x1a   :  { %310 = vmatmul.msk.bf16.vlgmr.msra.gmra.mxu0 %vm110_vm0, %v89_v5  ;;  %v400_v26 = vld [vmem:[%s578_s4] ss:$0 sm:$0xff] }
  0x1b   :  { %281 = vmatpush.bf16.msra.mxu2 %v391_v13  ;;  %v401_v32 = vld [vmem:[%s580_s6] ss:$0 sm:$0xff] }
  0x1c   :  { %199 = vmatpush.bf16.msra.mxu1 %v382_v6 }
  0x1f   :  { %282 = vmatpush.bf16.msra.mxu2 %v390_v14 }
  0x20   :  { %200 = vmatpush.bf16.msra.mxu1 %v381_v7 }
  0x23   :  { %283 = vmatpush.bf16.msra.mxu2 %v389_v15 }
  0x24   :  { %201 = vmatpush.bf16.msra.mxu1 %v380_v8 }
  0x27   :  { %284 = vmatpush.bf16.msra.mxu2 %v388_v16 }
  0x28   :  { %202 = vmatpush.bf16.msra.mxu1 %v379_v9 }
  0x2b   :  { %285 = vmatpush.bf16.msra.mxu2 %v387_v17 }
  0x2c   :  { %203 = vmatpush.bf16.msra.mxu1 %v378_v10 }
  0x2f   :  { %286 = vmatpush.bf16.msra.mxu2 %v386_v24 }
  0x30   :  { %204 = vmatpush.bf16.msra.mxu1 %v377_v11 }
  0x33   :  { %287 = vmatpush.bf16.msra.mxu2 %v385_v25 }
  0x97   :  { %v123_v19 = vpop.f32.mrf.mxu0 }
  0x98   :  { %v124_v20 = vadd.f32 %v399_v18, %v123_v19 }
  0x9a   :  { %v127_v21 = vmax.f32 %v124_v20, 0.0 }
  0x9c   :  { %v128_v22 = vpack.c.bf16 %v127_v21, %v127_v21 }
  0x9e   :  { %205 = vmatmul.bf16.vlgmr.msra.gmra.mxu1 %v128_v22 }
  0x9f   :  { %v125_v23 = vpop.f32.mrf.mxu0 }
 0x11b   :  { %v206_v27 = vpop.f32.mrf.mxu1 }
 0x11c   :  { %v207_v28 = vadd.f32 %v400_v26, %v206_v27 }
 0x11e   :  { %v210_v29 = vmax.f32 %v207_v28, 0.0 }
 0x120   :  { %v211_v30 = vpack.c.bf16 %v210_v29, %v210_v29 }
 0x122   :  { %288 = vmatmul.bf16.vlgmr.msra.gmra.mxu2 %v211_v30 }
 0x123   :  { %v208_v31 = vpop.f32.mrf.mxu1 }
 0x1a5   :  { %v289_v33 = vpop.f32.mrf.mxu2 }
 0x1a6   :  { %v290_v34 = vadd.f32 %v401_v32, %v289_v33 }
 0x1a8   :  { %294 = vst.msk [vmem:[%s581_s7] sm:$0xff] %vm293_vm1, %v290_v34 }
 0x1ad   :  { %v291_v35 = vpop.f32.mrf.mxu2 }
 0x1ae   :  { %299 = vsyncpa [#allocation3], 1 }
 0x1af   :  { %300 = vsyncpa [#allocation5], 1 }
 0x1b0   :  { %301 = vsyncpa [#allocation8], 1 }

</bundles_post_ra>
